<compile_context>
chip_gen: v6e
topology: v6e:2x2x1
jax: 0.10.0
libtpu: 0.0.40
codegen_flags: <defaults>
</compile_context>

<pallas_src>
import functools

import jax
import jax.numpy as jnp
from jax.experimental import pallas as pl
from jax.experimental.pallas import tpu as pltpu

NEG_SLOPE = 0.01  # torch.nn.LeakyReLU default


def _round_up(v, m):
    return ((v + m - 1) // m) * m


def _vmem_budget_bytes():
    """Per-chip scoped-VMEM budget (leaves headroom under physical VMEM)."""
    phys = 64 * 1024 * 1024  # conservative default = v7x per-TC VMEM
    try:
        info = pltpu.get_tpu_info()
        phys = int(getattr(info, "vmem_capacity_bytes", phys))
    except Exception:
        pass
    if phys <= 64 * 1024 * 1024:
        return int(0.60 * phys)   # v7x: ~38 MiB of 64 MiB
    return int(0.75 * phys)       # v5e/v6e: ~96 MiB of 128 MiB


def _conv1d_block_kernel(x_ref, corr_ref, w_ref, b_ref, o_ref, *, whole_corr):
    # x_ref:    (1, C_in, TL)         input tile: channels on sublanes, L on lanes
    # corr_ref: (T, C_out, 2) or (1, C_out, 2)   precomputed f32 boundary corrections
    # w_ref:    (3*C_out, C_in)       taps stacked along rows: rows [k*C_out:(k+1)*C_out] = W_k
    # b_ref:    (C_out, 1)            bias (f32)
    # o_ref:    (1, C_out, TL)        output tile (lane-dense store)
    c_out = o_ref.shape[1]
    tl = o_ref.shape[2]

    x = x_ref[0]                                   # (C_in, TL)
    w = w_ref[...]                                 # (3*C_out, C_in)
    j = pl.program_id(1) if whole_corr else 0
    corr = corr_ref[j]                             # (C_out, 2) f32

    # All three taps in a single MXU matmul, f32 accumulation.
    y = jnp.dot(w, x, preferred_element_type=jnp.float32)   # (3*C_out, TL)
    y0 = y[0 * c_out:1 * c_out, :]                 # tap k=0: multiplies x[l-1]
    y1 = y[1 * c_out:2 * c_out, :]                 # tap k=1: multiplies x[l]
    y2 = y[2 * c_out:3 * c_out, :]                 # tap k=2: multiplies x[l+1]

    lane = jax.lax.broadcasted_iota(jnp.int32, (c_out, tl), 1)
    # tap 0 products shift right by one lane; column 0 comes from the precomputed left corr
    y0s = jnp.where(lane == 0, corr[:, 0:1], pltpu.roll(y0, shift=1, axis=1))
    # tap 2 products shift left by one lane; last column comes from the precomputed right corr
    y2s = jnp.where(lane == tl - 1, corr[:, 1:2], pltpu.roll(y2, shift=tl - 1, axis=1))
    # TODO(synk): if profiling ever shows VALU saturation at large C/bf16, replace the
    # two full-tile selects with narrow 1-lane column fixups after the store.

    acc = y0s + y1 + y2s + b_ref[...]              # bias broadcasts along lanes
    acc = jnp.where(acc > 0, acc, NEG_SLOPE * acc) # LeakyReLU(0.01)
    o_ref[0] = acc.astype(o_ref.dtype)


def conv1d_block(x, weight, bias, *, tl_max=1024, compute_dtype=None):
    """Conv1d(k=3, padding='same', bias=True) + LeakyReLU(0.01).

    x: (N, C_in, L); weight: (C_out, C_in, 3); bias: (C_out,).  Returns (N, C_out, L).
    compute_dtype=jnp.bfloat16 is recommended on v6e/v7x (accumulation stays f32).
    """
    N, C_in, L = x.shape
    C_out = weight.shape[0]
    out_dtype = x.dtype

    if compute_dtype is not None:
        x = x.astype(compute_dtype)
        weight = weight.astype(compute_dtype)
    cdt = x.dtype
    isz_in = jnp.dtype(cdt).itemsize
    isz_out = jnp.dtype(out_dtype).itemsize

    # ---- pad C_out to a sublane multiple so the per-tap slices stay aligned ----
    C_out_p = _round_up(C_out, 8)
    w_p = weight if C_out_p == C_out else jnp.pad(weight, ((0, C_out_p - C_out), (0, 0), (0, 0)))
    b_p = bias if C_out_p == C_out else jnp.pad(bias, ((0, C_out_p - C_out),))

    # ---- per-chip VMEM budget and tile-length choice (TL always a multiple of 128) ----
    budget = _vmem_budget_bytes()
    sub_in = max(8, 32 // isz_in)                  # sublane packing of the compute dtype
    w_bytes = _round_up(3 * C_out_p, sub_in) * _round_up(C_in, 128) * isz_in
    b_bytes = _round_up(C_out_p, 8) * 128 * 4

    def _stream_bytes(tl):                         # double-buffered x and out tiles
        return (2 * _round_up(C_in, sub_in) * tl * isz_in
                + 2 * C_out_p * tl * isz_out)

    tl_cap = max(128, min(_round_up(tl_max, 128), _round_up(L, 128)))
    TL = tl_cap
    while TL > 128 and _stream_bytes(TL) + 2 * (w_bytes + b_bytes) > budget:
        TL -= 128
    # TODO(synk): if even TL=128 overflows the budget (huge C_in*C_out in f32 on v7x),
    # pass compute_dtype=jnp.bfloat16 at the call site to halve weight/tile bytes.

    L_pad = _round_up(L, TL)
    num_tiles = L_pad // TL
    xp = x if L_pad == L else jnp.pad(x, ((0, 0), (0, 0), (0, L_pad - L)))

    # ---- precomputed boundary corrections (replaces the in-kernel 2-lane halo matmul) ----
    # corr[n, j, :, 0] = W0 @ x[n, :, j*TL - 1]   (zero at the left sequence edge)
    # corr[n, j, :, 1] = W2 @ x[n, :, (j+1)*TL]   (zero at the right sequence edge)
    zcol = jnp.zeros((N, C_in, 1), dtype=cdt)
    left_cols = jnp.concatenate(
        [zcol, xp[:, :, TL - 1::TL][:, :, :num_tiles - 1]], axis=2)     # (N, C_in, T)
    right_cols = jnp.concatenate([xp[:, :, TL::TL], zcol], axis=2)       # (N, C_in, T)
    w0 = w_p[:, :, 0].astype(jnp.float32)
    w2 = w_p[:, :, 2].astype(jnp.float32)
    corr = jnp.stack(
        [jnp.einsum("oc,nct->nto", w0, left_cols.astype(jnp.float32)),
         jnp.einsum("oc,nct->nto", w2, right_cols.astype(jnp.float32))],
        axis=-1,
    ).reshape(N * num_tiles, C_out_p, 2)                                 # f32

    # Fetch the whole per-batch-row correction block once per n (constant index map
    # over j -> no per-step 2-lane DMA); fall back to per-step blocks only if large.
    corr_buf_bytes = num_tiles * _round_up(C_out_p, 8) * 128 * 4
    whole_corr = (_stream_bytes(TL) + 2 * (w_bytes + b_bytes) + 2 * corr_buf_bytes) <= budget
    if whole_corr:
        corr_spec = pl.BlockSpec((num_tiles, C_out_p, 2), lambda n, j: (n, 0, 0))
    else:
        corr_spec = pl.BlockSpec((1, C_out_p, 2),
                                 lambda n, j: (n * num_tiles + j, 0, 0))

    # Weights tap-major, stacked along the M dim: rows [k*C_out_p:(k+1)*C_out_p] = W_k
    w_cat = jnp.transpose(w_p, (2, 0, 1)).reshape(3 * C_out_p, C_in).astype(cdt)
    b_col = b_p.reshape(C_out_p, 1).astype(jnp.float32)

    kernel = functools.partial(_conv1d_block_kernel, whole_corr=whole_corr)

    # TODO(synk): for tiny channel counts (C_in < 8 f32) one could batch several
    # N rows per grid step to fill the sublanes; neutral at realistic C, omitted.
    out = pl.pallas_call(
        kernel,
        out_shape=jax.ShapeDtypeStruct((N, C_out_p, L_pad), out_dtype),
        grid=(N, num_tiles),
        in_specs=[
            pl.BlockSpec((1, C_in, TL), lambda n, j: (n, 0, j)),
            corr_spec,
            # Constant index maps: re-DMAed only when the block index changes,
            # so the weight/bias blocks are effectively fetched once.
            pl.BlockSpec((3 * C_out_p, C_in), lambda n, j: (0, 0)),
            pl.BlockSpec((C_out_p, 1), lambda n, j: (0, 0)),
        ],
        out_specs=pl.BlockSpec((1, C_out_p, TL), lambda n, j: (n, 0, j)),
        compiler_params=pltpu.CompilerParams(
            dimension_semantics=("parallel", "parallel"),
            vmem_limit_bytes=int(budget),
        ),
    )(xp, corr, w_cat, b_col)

    # Strip padding (no-op when C_out % 8 == 0 and L % TL == 0).
    return out[:, :C_out, :L]


def _reference(x_ncl, weight, bias):
    # pure-JAX reference: conv1d 'same' + LeakyReLU(0.01)
    y = jax.lax.conv_general_dilated(
        x_ncl, weight,
        window_strides=(1,), padding="SAME",
        dimension_numbers=("NCH", "OIH", "NCH"))
    y = y + bias[None, :, None]
    return jnp.where(y > 0, y, NEG_SLOPE * y)


if __name__ == "__main__":
    key = jax.random.PRNGKey(0)
    k_x, k_w, k_b, k_x2 = jax.random.split(key, 4)

    N, C_in, C_out = 2, 4, 8
    weight = 0.1 * jax.random.normal(k_w, (C_out, C_in, 3), dtype=jnp.float32)
    bias = 0.1 * jax.random.normal(k_b, (C_out,), dtype=jnp.float32)

    # Case 1: L larger than one tile and not a tile multiple -> exercises
    # L-tiling, cross-tile boundary corrections, and L padding/stripping.
    L = 200
    x = jax.random.normal(k_x, (N, C_in, L), dtype=jnp.float32)
    out = jax.block_until_ready(conv1d_block(x, weight, bias, tl_max=128))
    ref = _reference(x, weight, bias)
    assert out.shape == (N, C_out, L)
    assert jnp.allclose(out, ref, atol=1e-5, rtol=1e-5)

    # Case 2: tiny L (single 128-lane tile, lane-dense store).
    L2 = 16
    x2 = jax.random.normal(k_x2, (N, C_in, L2), dtype=jnp.float32)
    out2 = jax.block_until_ready(conv1d_block(x2, weight, bias))
    ref2 = _reference(x2, weight, bias)
    assert out2.shape == (N, C_out, L2)
    assert jnp.allclose(out2, ref2, atol=1e-5, rtol=1e-5)

    # Case 3: bf16 compute path (recommended on v6e/v7x).  Tolerance reflects
    # input/weight quantization only — accumulation stays f32.
    out3 = jax.block_until_ready(
        conv1d_block(x, weight, bias, tl_max=128, compute_dtype=jnp.bfloat16))
    assert out3.shape == (N, C_out, L)
    assert jnp.allclose(out3, ref, atol=5e-2, rtol=5e-2)

    print("KERNEL_OK")
</pallas_src>

<mosaic_0001>
module attributes {stable_mosaic.version = 11 : i64} {
  func.func @_conv1d_block_kernel(%arg0: i32, %arg1: i32, %arg2: memref<1x4x128xf32, #tpu.memory_space<vmem>>, %arg3: memref<2x8x2xf32, #tpu.memory_space<vmem>>, %arg4: memref<24x4xf32, #tpu.memory_space<vmem>>, %arg5: memref<8x1xf32, #tpu.memory_space<vmem>>, %arg6: memref<1x8x128xf32, #tpu.memory_space<vmem>>) attributes {dimension_semantics = [#tpu.dimension_semantics<parallel>, #tpu.dimension_semantics<parallel>], iteration_bounds = array<i64: 2, 2>, scalar_prefetch = 0 : i64, scratch_operands = 0 : i64, tpu.core_type = #tpu.core_type<tc>, window_params = [{transform_indices = @transform_0, window_bounds = array<i64: 1, 4, 128>}, {transform_indices = @transform_1, window_bounds = array<i64: 2, 8, 2>}, {pipeline_mode = #tpu.pipeline_mode<synchronous>, transform_indices = @transform_2, window_bounds = array<i64: 24, 4>}, {pipeline_mode = #tpu.pipeline_mode<synchronous>, transform_indices = @transform_3, window_bounds = array<i64: 8, 1>}, {transform_indices = @transform_4, window_bounds = array<i64: 1, 8, 128>}]} {
    %c0 = arith.constant 0 : index
    %c0_0 = arith.constant 0 : index
    %c0_1 = arith.constant 0 : index
    %0 = vector.load %arg2[%c0, %c0_0, %c0_1] : memref<1x4x128xf32, #tpu.memory_space<vmem>>, vector<1x4x128xf32>
    %1 = vector.shape_cast %0 : vector<1x4x128xf32> to vector<4x128xf32>
    %c0_2 = arith.constant 0 : index
    %c0_3 = arith.constant 0 : index
    %2 = vector.load %arg4[%c0_2, %c0_3] : memref<24x4xf32, #tpu.memory_space<vmem>>, vector<24x4xf32>
    %3 = arith.index_cast %arg1 : i32 to index
    %c0_4 = arith.constant 0 : index
    %c0_5 = arith.constant 0 : index
    %4 = vector.load %arg3[%3, %c0_4, %c0_5] : memref<2x8x2xf32, #tpu.memory_space<vmem>>, vector<1x8x2xf32>
    %5 = vector.shape_cast %4 : vector<1x8x2xf32> to vector<8x2xf32>
    %cst = arith.constant dense<0.000000e+00> : vector<24x128xf32>
    %6 = tpu.matmul %2, %1, %cst {dimension_numbers = #tpu.dot_dimension_numbers<[1], [0], [0], [1], [0, 0, 1, 1], [], []>} : vector<24x4xf32>, vector<4x128xf32>, vector<24x128xf32> -> vector<24x128xf32>
    %7 = vector.extract_strided_slice %6 {offsets = [0, 0], sizes = [8, 128], strides = [1, 1]} : vector<24x128xf32> to vector<8x128xf32>
    %8 = vector.extract_strided_slice %6 {offsets = [8, 0], sizes = [8, 128], strides = [1, 1]} : vector<24x128xf32> to vector<8x128xf32>
    %9 = vector.extract_strided_slice %6 {offsets = [16, 0], sizes = [8, 128], strides = [1, 1]} : vector<24x128xf32> to vector<8x128xf32>
    %10 = tpu.iota {dimensions = array<i32: 1>} : vector<8x128xi32>
    %c0_i32 = arith.constant 0 : i32
    %11 = vector.broadcast %c0_i32 : i32 to vector<8x128xi32>
    %12 = arith.cmpi eq, %10, %11 : vector<8x128xi32>
    %13 = vector.extract_strided_slice %5 {offsets = [0, 0], sizes = [8, 1], strides = [1, 1]} : vector<8x2xf32> to vector<8x1xf32>
    %c1_i32 = arith.constant 1 : i32
    %14 = tpu.dynamic_rotate %7 by %c1_i32 dim 1 : vector<8x128xf32>, i32 -> vector<8x128xf32>
    %15 = vector.shape_cast %13 : vector<8x1xf32> to vector<8x1xf32>
    %16 = vector.broadcast %15 : vector<8x1xf32> to vector<8x128xf32>
    %17 = arith.select %12, %16, %14 : vector<8x128xi1>, vector<8x128xf32>
    %c127_i32 = arith.constant 127 : i32
    %18 = vector.broadcast %c127_i32 : i32 to vector<8x128xi32>
    %19 = arith.cmpi eq, %10, %18 : vector<8x128xi32>
    %20 = vector.extract_strided_slice %5 {offsets = [0, 1], sizes = [8, 1], strides = [1, 1]} : vector<8x2xf32> to vector<8x1xf32>
    %c127_i32_6 = arith.constant 127 : i32
    %21 = tpu.dynamic_rotate %9 by %c127_i32_6 dim 1 : vector<8x128xf32>, i32 -> vector<8x128xf32>
    %22 = vector.shape_cast %20 : vector<8x1xf32> to vector<8x1xf32>
    %23 = vector.broadcast %22 : vector<8x1xf32> to vector<8x128xf32>
    %24 = arith.select %19, %23, %21 : vector<8x128xi1>, vector<8x128xf32>
    %25 = arith.addf %17, %8 : vector<8x128xf32>
    %26 = arith.addf %25, %24 : vector<8x128xf32>
    %c0_7 = arith.constant 0 : index
    %c0_8 = arith.constant 0 : index
    %27 = vector.load %arg5[%c0_7, %c0_8] : memref<8x1xf32, #tpu.memory_space<vmem>>, vector<8x1xf32>
    %28 = vector.broadcast %27 : vector<8x1xf32> to vector<8x128xf32>
    %29 = arith.addf %26, %28 : vector<8x128xf32>
    %cst_9 = arith.constant 0.000000e+00 : f32
    %30 = vector.broadcast %cst_9 : f32 to vector<8x128xf32>
    %31 = arith.cmpf ogt, %29, %30 : vector<8x128xf32>
    %cst_10 = arith.constant 0.00999999977 : f32
    %32 = vector.broadcast %cst_10 : f32 to vector<8x128xf32>
    %33 = arith.mulf %32, %29 : vector<8x128xf32>
    %34 = arith.select %31, %29, %33 : vector<8x128xi1>, vector<8x128xf32>
    %c0_11 = arith.constant 0 : index
    %c0_12 = arith.constant 0 : index
    %c0_13 = arith.constant 0 : index
    %35 = vector.load %arg6[%c0_11, %c0_12, %c0_13] : memref<1x8x128xf32, #tpu.memory_space<vmem>>, vector<1x8x128xf32>
    %36 = vector.shape_cast %35 : vector<1x8x128xf32> to vector<8x128xf32>
    %37 = vector.shape_cast %34 : vector<8x128xf32> to vector<1x8x128xf32>
    tpu.vector_store %arg6[%c0_11, %c0_12, %c0_13], %37 {strides = array<i32>} : memref<1x8x128xf32, #tpu.memory_space<vmem>>, vector<1x8x128xf32>,
    return
  }
  func.func @transform_0(%arg0: i32, %arg1: i32) -> (i32, i32, i32) {
    %c0_i32 = arith.constant 0 : i32
    %c0_i32_0 = arith.constant 0 : i32
    return %arg0, %c0_i32, %arg1 : i32, i32, i32
  }
  func.func @transform_1(%arg0: i32, %arg1: i32) -> (i32, i32, i32) {
    %c0_i32 = arith.constant 0 : i32
    %c0_i32_0 = arith.constant 0 : i32
    %c0_i32_1 = arith.constant 0 : i32
    return %arg0, %c0_i32, %c0_i32_0 : i32, i32, i32
  }
  func.func @transform_2(%arg0: i32, %arg1: i32) -> (i32, i32) {
    %c0_i32 = arith.constant 0 : i32
    %c0_i32_0 = arith.constant 0 : i32
    %c0_i32_1 = arith.constant 0 : i32
    return %c0_i32, %c0_i32_0 : i32, i32
  }
  func.func @transform_3(%arg0: i32, %arg1: i32) -> (i32, i32) {
    %c0_i32 = arith.constant 0 : i32
    %c0_i32_0 = arith.constant 0 : i32
    %c0_i32_1 = arith.constant 0 : i32
    return %c0_i32, %c0_i32_0 : i32, i32
  }
  func.func @transform_4(%arg0: i32, %arg1: i32) -> (i32, i32, i32) {
    %c0_i32 = arith.constant 0 : i32
    %c0_i32_0 = arith.constant 0 : i32
    return %arg0, %c0_i32, %arg1 : i32, i32, i32
  }
}

</mosaic_0001>

<bundles_post_ra>
// kernel: tpu_custom_call.1
= control target key start
LH: loop header
LB: loop body
LE: loop exit
PB: predicated region body
PF: predicated region fallthrough
CT: control target
= control target key end

     0   :  { %9 = vsyncpa [#allocation3], 0  ;;  %s882_s0 = inlined_call_operand.vmem [shape: f32[2,4,256], index: 0, kind: input, shape index: {}]   ;;  %s883_s1 = inlined_call_operand.vmem [shape: f32[4,8,2], index: 1, kind: input, shape index: {}]   ;;  %s884_s2 = inlined_call_operand.vmem [shape: f32[24,4], index: 2, kind: input, shape index: {}]   ;;  %s885_s3 = inlined_call_operand.vmem [shape: f32[8,1], index: 3, kind: input, shape index: {}]   ;;  %s886_s4 = inlined_call_operand.hbm [shape: f32[2,8,256], index: 4, kind: output, shape index: {}]  }
   0x1   :  { %11 = vsyncpa [#allocation3 + $0x1], 0  ;;  %s728_s15 = smov 0   ;;  %s730_s16 = smov 0  }
   0x2   :  { %s732_s17 = smov 0   ;;  %s734_s18 = smov 0  }
   0x3   :  { %s736_s19 = smov 0   ;;  %s738_s20 = smov 0  }
   0x4   :  { %s740_s21 = smov 0   ;;  %s742_s22 = smov 0  }
   0x5 LB: > { %s484_s23 = sadd.s32 4294967295, %s694_s22   ;;  %s485_s24 = sadd.s32 4294967294, %s694_s22   ;;  %s694_s22 = sphi %s742_s22, %s17_s22   ;;  %s690_s21 = sphi %s740_s21, %s895_s21   ;;  %s686_s20 = sphi %s738_s20, %s894_s20   ;;  %s682_s19 = sphi %s736_s19, %s893_s19   ;;  %s678_s18 = sphi %s734_s18, %s892_s18   ;;  %s674_s17 = sphi %s732_s17, %s891_s17   ;;  %s670_s16 = sphi %s730_s16, %s890_s16   ;;  %s666_s15 = sphi %s728_s15, %s889_s15  }
   0x6   : > { %s26_s25 = sadd.s32 1, %s686_s20  ;;  %s29_s26 = sadd.s32 1, %s690_s21 }
   0x7   : > { %p27_p0 = scmp.ge.s32.totalorder %s26_s25, 2  ;;  %p144_p1 = scmp.ne.s32.totalorder %s674_s17, %s670_s16 }
   0x8   : > { %p145_p2 = scmp.eq.s32.totalorder %s484_s23, 3  ;;  %p150_p5 = scmp.ne.s32.totalorder %s670_s16, %s666_s15 }
   0x9   : > { %s897_s25 = smov (%p27_p0, %s26_s25), 0  ;;  %s899_s26 = smov (!%p27_p0, %s29_s26), %s690_s21 }
   0xa   : > { %s130_s27 = ssub.s32 %s686_s20, %s897_s25  ;;  %p779_p3 = por %p145_p2, %p144_p1 }
   0xb   : > { %p31_p4 = scmp.ge.s32.totalorder %s899_s26, 2  ;;  %p151_p6 = scmp.eq.s32.totalorder %s485_s24, 3 }
   0xc   : > { %p488_p7 = scmp.ge.s32.totalorder %s694_s22, 1  ;;  %p195_p9 = scmp.lt.s32.totalorder %s694_s22, 5 }
   0xd   : > { %s901_s26 = smov (%p31_p4, %s899_s26), 0  ;;  %p788_p8 = por %p151_p6, %p150_p5 }
   0xe   : > { %s129_s30 = ssub.s32 %s690_s21, %s901_s26  ;;  %s134_s5 = sadd.s32 1, %s674_s17 }
   0xf   : > { %s131_s6 = sor.u32 %s130_s27, %s129_s30  ;;  %p196_p10 = pnand %p488_p7, %p195_p9 }
  0x10   : > { %p132_p11 = scmp.eq.s32.totalorder %s131_s6, 0  ;;  %p229_p12 = scmp.lt.s32.totalorder (!%p196_p10), %s682_s19, 1 }
  0x11   : > { %199 = sbr.rel (%p196_p10) target bundleno = 363 (0x16b), region = 36  ;;  %p231_p13 = scmp.lt.s32.totalorder (!%p196_p10), %s678_s18, 1 }
  0x12   : > { %s797_s7 = scalar_select %p132_p11, %s674_s17, %s134_s5  }
  0x13   : > { %s805_s10 = sshll.u32 (!%p196_p10), %s682_s19, 1  ;;  %s494_s9 = sshll.u32 (!%p196_p10), %s678_s18, 3 }
  0x14   : > { %p238_p0 = scmp.lt.s32.totalorder (!%p196_p10), %s805_s10, 3  ;;  %s701_s5 = smov (!%p196_p10), 127  }
  0x15   : > { %s226_s6 = sand.u32 (!%p196_p10), 1, %s670_s16  }
  0x16   : > { %v696_v0 = vmov 0.0   ;;  %v365_v1 = vld [vmem:[%s885_s3] sm:$0xff]  ;;  %s903_s19 = smov (!%p229_p12, %s682_s19), 1  ;;  %vm697_vm0 = vmmov 0   ;;  %v698_v2 = vmov 0   ;;  %vm260_vm1 = vcmask 1043456  }
  0x17   : > { %508 = vmatprep.subr.mxu0 %v696_v0  ;;  %519 = vmatprep.subr.mxu1 %v696_v0  ;;  %s232_s11 = scalar_select %p231_p13, %s678_s18, 1  ;;  %v244_v3 = vld [vmem:[%s884_s2] sm:$0xff]  ;;  %vm250_vm2 = vcmask 31744   ;;  %v245_v4 = vld [vmem:[%s884_s2 + $0x8] sm:$0xff]  ;;  %v246_v6 = vld [vmem:[%s884_s2 + $0x10] sm:$0xff]  ;;  %v699_v8 = vmov 1   ;;  %v344_v15 = vlaneseq }
  0x18   : > { %510 = vmatprep.mubr.msk.f32.mxu0 %vm697_vm0, %v696_v0  ;;  %513 = vmatprep.mubr.msk.f32.mxu1 %vm697_vm0, %v696_v0  ;;  %s490_s12 = sshll.u32 %s903_s19, 1  ;;  %s489_s8 = sshll.u32 %s226_s6, 3 }
  0x19   : > { %600 = vset.pattern.permute.xlu1 %v698_v2  ;;  %598 = vset.pattern.permute.xlu0 %v698_v2  ;;  %s234_s13 = sadd.s32 %s490_s12, %s232_s11  ;;  %v345_v17 = vand.u32 127, %v344_v15 }
  0x1a   : > { %368 = vperm.xlu1 %600, %v365_v1   ;;  %s491_s14 = sshll.u32 %s234_s13, 2 }
  0x1b   : > { %s236_s27 = scalar_lea.vmem %s882_s0, %s491_s14  ;;  %vm346_vm3 = vcmp.eq.s32.totalorder %v345_v17, 0  ;;  %vm355_vm4 = vcmp.eq.s32.totalorder %v345_v17, 127 }
  0x1c   : > { %v243_v5 = vld [vmem:[%s236_s27] sm:$0xf]  ;;  %s239_s19 = scalar_select %p238_p0, %s805_s10, 3 }
  0x1d   : > { %509 = vmatpush3.msk.msra.mxu0 %vm260_vm1, %v243_v5  ;;  %520 = vmatpush3.msk.msra.mxu1 %vm260_vm1, %v243_v5  ;;  %s700_s27 = smov 1  }
  0x1e   : > { %511 = vmatmul.mubr.msk.f32.vlgmr.msra.gmra.mxu0 %vm250_vm2, %v244_v3  ;;  %514 = vmatmul.mubr.msk.f32.vlgmr.msra.gmra.mxu1 %vm250_vm2, %v245_v4  ;;  %s493_s11 = sshll.u32 %s239_s19, 3  ;;  %s388_s19 = sadd.s32 %s678_s18, %s805_s10 }
  0x1f   : > { %516 = vmatprep.mubr.msk.f32.mxu1 %vm697_vm0, %v696_v0  ;;  %s241_s24 = scalar_lea.vmem %s883_s1, %s493_s11  ;;  %s228_s11 = scalar_lea.vmem [#allocation2], %s489_s8 }
  0x20   : > { %s248_s30 = scalar_lea.vmem %s241_s24, %s494_s9  ;;  %s501_s9 = sshll.u32 %s388_s19, 7 }
  0x21   : > { %v249_v7 = vld [vmem:[%s248_s30] sm:$0xff]  ;;  %s392_s12 = sshll.u32 %s228_s11, 4  ;;  %s836_s23 = scalar_lea.hbm %s886_s4, %s501_s9  ;;  %s393_s12 = int_to_ptr.vmem [resolvable:$true] %s392_s12 }
  0x22   : > { %517 = vmatmul.mubr.msk.f32.gmra.mxu1 %vm250_vm2, %v246_v6  ;;  %351 = vperm.xlu0 %598, %v249_v7   ;;  %s377_s24 = scalar_lea.sflag [#allocation3], %s226_s6  ;;  %s602_s30 = scalar_lea.vmem %s393_s12, 128 }
  0x23   : > { %p603_p1 = scmp.ne.s32.totalorder %s393_s12, %s602_s30  ;;  %s702_s18 = smov [#allocation2]  }
  0x24   : > { %s606_s10 = sshll.u32 %s702_s18, 4  ;;  %s607_s10 = int_to_ptr.vmem [resolvable:$false] %s606_s10 }
  0x25   : > { %p604_p2 = pnand %p603_p1, %p779_p3  ;;  %p609_p5 = scmp.lt.s32.totalorder %s393_s12, %s607_s10 }
  0x26   : > { %599 = vset.pattern.permute.xlu0 %v699_v8 }
  0x27   : > { %359 = vperm.xlu0 %599, %v249_v7   ;;  %p605_p4 = pneg %p604_p2 }
  0x2b   : > { %601 = vset.pattern.permute.xlu0 %v698_v2 }
  0x95   : > { %v369_v16 = vpop.permute.xlu1 %368 }
  0x9d   : > { %v352_v18 = vpop.permute.xlu0 %351 }
  0xa2   : > { %v360_v21 = vpop.permute.xlu0 %359 }
  0xde   : > { %v330_v9 = vpop.f32.mrf.mxu0  ;;  %v335_v10 = vpop.f32.mrf.mxu1 }
  0xdf   : > { %347 = vrot.lane.b32.xlu1 %v330_v9, %s700_s27  ;;  %s608_s27 = scalar_lea.vmem %s607_s10, 256 }
  0xe0   : > { %v512_v11 = vpop.f32.mrf.mxu0  ;;  %v515_v12 = vpop.f32.mrf.mxu1  ;;  %p610_p6 = scmp.lt.s32.totalorder %s608_s27, %s602_s30 }
  0xe2   : > { %v340_v13 = vpop.f32.mrf.mxu1  ;;  %p611_p7 = por %p610_p6, %p609_p5 }
  0xe3   : > { %356 = vrot.lane.b32.xlu1 %v340_v13, %s701_s5 }
  0xe4   : > { %v518_v14 = vpop.f32.mrf.mxu1  ;;  %p612_p9 = pnand %p611_p7, %p605_p4 }
 0x151   : > { %v348_v19 = vpop.permute.xlu1 %347 }
 0x152   : > { %v354_v20 = vsel %vm346_vm3, %v352_v18, %v348_v19 }
 0x153   : > { %v363_v22 = vadd.f32 %v354_v20, %v335_v10 }
 0x155   : > { %v357_v23 = vpop.permute.xlu1 %356 }
 0x156   : > { %v362_v24 = vsel %vm355_vm4, %v360_v21, %v357_v23 }
 0x157   : > { %v364_v25 = vadd.f32 %v363_v22, %v362_v24 }
 0x159   : > { %v371_v26 = vadd.f32 %v369_v16, %v364_v25 }
 0x15b   : > { %vm372_vm5 = vcmp.gt.f32.partialorder %v371_v26, 0.0  ;;  %v373_v27 = vmul.f32 0.01, %v371_v26 }
 0x15d   : > { %v374_v28 = vsel %vm372_vm5, %v371_v26, %v373_v27 }
 0x15e   : > { %375 = vst [vmem:[%s228_s11] sm:$0xff] %v374_v28 }
 0x15f   : > { %615 = shalt.err (!%p612_p9)
}
 0x160   : > { %s616_s5 = scalar_lea.hbm %s836_s23, 128  ;;  %s620_s19 = scalar_lea.hbm %s886_s4, 512 }
 0x161   : > { %p617_p10 = scmp.ne.s32.totalorder %s836_s23, %s616_s5  ;;  %p621_p13 = scmp.lt.s32.totalorder %s836_s23, %s886_s4 }
 0x162   : > { %p622_p0 = scmp.lt.s32.totalorder %s620_s19, %s616_s5 }
 0x163   : > { %p618_p11 = pnand %p617_p10, %p779_p3 }
 0x164   : > { %p623_p1 = por %p622_p0, %p621_p13 }
 0x165   : > { %p619_p12 = pneg %p618_p11 }
 0x167   : > { %p624_p2 = pnand %p623_p1, %p619_p12 }
 0x169   : > { %627 = shalt.err (!%p624_p2)
}
 0x16a   : > { %521 = dma.vmem_to_hbm [thread:$0]  (%p779_p3), %s393_s12, 128, %s836_s23, %s377_s24  }
 0x16b PF: > { %p527_p4 = scmp.ge.s32.totalorder %s694_s22, 2  ;;  %s404_s13 = sand.u32 1, %s666_s15  }
 0x16c   : > { %s405_s14 = scalar_lea.sflag [#allocation3], %s404_s13 }
 0x16d   : > { %p524_p5 = pnand %p527_p4, %p788_p8 }
 0x16f   : > { %p525_p6 = pneg %p524_p5 }
 0x171   : > { %661 = dma.done.wait (%p525_p6), %s405_s14, 128  }
 0x172   : > { %663 = vsyncadd (%p525_p6), %s405_s14, 4294967168  ;;  %s17_s22 = sadd.s32 1, %s694_s22   ;;  %s889_s15 = smov %s670_s16 }
 0x173   : > { %p14_p7 = scmp.ge.s32.totalorder %s17_s22, 6   ;;  %s890_s16 = smov %s674_s17 }
 0x174   : > { %s891_s17 = smov %s797_s7  ;;  %s892_s18 = smov %s686_s20 }
 0x175   : > { %s893_s19 = smov %s690_s21  ;;  %s894_s20 = smov %s897_s25 }
 0x176   : > { %s895_s21 = smov %s901_s26  ;;  %16 = sbr.rel (!%p14_p7) target bundleno = 5 (0x5), region = 75 }
 0x17b   :  { %410 = vsyncpa [#allocation3], 1 }
 0x17c   :  { %412 = vsyncpa [#allocation3 + $0x1], 1 }

</bundles_post_ra>
